<compile_context>
chip_gen: v7x
topology: tpu7x:2x2x1
jax: 0.10.0
libtpu: 0.0.40
codegen_flags: <defaults>
</compile_context>

<pallas_src>
import jax
import jax.numpy as jnp
from jax.experimental import pallas as pl
from jax.experimental.pallas import tpu as pltpu


def _proj_kernel(h_ref, w_ref, b_ref, out_ref):
    """One (tm, tn) logits tile: bf16 MXU matmul, f32 accumulation, f32 bias."""
    out_ref[...] = (
        jnp.dot(h_ref[...], w_ref[...], preferred_element_type=jnp.float32)
        + b_ref[...]
    )


def _round_up(x, m):
    return ((x + m - 1) // m) * m


def neural_lm_forward(input_ids, emb_table, out_w, out_b, *, tm=256, tn=512):
    """Forward pass: embedding gather + output projection to vocab logits.

    Args:
      input_ids: (B, S) int token ids.
      emb_table: (V, D) embedding matrix.
      out_w:     (D, V) output projection.
      out_b:     (V,)   output bias.

    Returns:
      dict with "last_hidden_state" (B, S, D) f32 and "logits" (B, S, V) f32.
    """
    B, S = input_ids.shape
    V, D = emb_table.shape
    T = B * S

    # Defensive clamp (torch.nn.Embedding would error on OOB ids).
    ids = jnp.clip(input_ids.reshape(T), 0, V - 1).astype(jnp.int32)

    # Embedding row-gather via native XLA gather; exact-f32 hidden is returned
    # directly as last_hidden_state.
    emb_f32 = emb_table.astype(jnp.float32)
    hidden_f32 = jnp.take(emb_f32, ids, axis=0)                    # (T, D) f32

    # --- Tiling choices -----------------------------------------------------
    # Token tile: big for MXU row occupancy (256 feeds v6e/v7x 256-row MXU and
    # is a multiple of v5e's 128); clamp to the (8-aligned) token count for
    # tiny inputs so we don't pad a 16-token demo out to 256 rows.
    tm = max(8, min(tm, _round_up(T, 8)))
    T_pad = _round_up(T, tm)
    # Vocab tile: lane-dense multiple of 128 (and of 256 for v6e/v7x), clamped
    # to the (128-aligned) vocab size.
    tn = min(tn, _round_up(V, 128))
    V_pad = _round_up(V, tn)

    n_t = T_pad // tm
    n_v = V_pad // tn

    # bf16 MXU operands, cast ONCE here (not per vocab tile inside the kernel).
    hidden_bf16 = hidden_f32.astype(jnp.bfloat16)
    if T_pad != T:
        hidden_bf16 = jnp.pad(hidden_bf16, ((0, T_pad - T), (0, 0)))
    w_bf16 = out_w.astype(jnp.bfloat16)
    bias_2d = out_b.reshape(1, V).astype(jnp.float32)
    if V_pad != V:
        w_bf16 = jnp.pad(w_bf16, ((0, 0), (0, V_pad - V)))
        bias_2d = jnp.pad(bias_2d, ((0, 0), (0, V_pad - V)))

    # VMEM budget: double-buffered hidden/W/bias tiles + logits tile, plus 2x
    # headroom for compiler-internal scratch; stays well below v7x's 64 MiB.
    tile_bytes = 2 * (tm * D * 2 + D * tn * 2 + tn * 4 + tm * tn * 4)
    vmem_limit = int(min(48 * 1024 * 1024, max(8 * 1024 * 1024, 2 * tile_bytes)))

    # Real HBM traffic under the vocab-outer loop order:
    #   hidden re-streamed once per vocab tile, W streamed exactly once,
    #   bias read once, logits written once.
    flops = 2 * T_pad * D * V_pad
    bytes_accessed = (
        n_v * T_pad * D * 2      # bf16 hidden, re-streamed per vocab tile
        + D * V_pad * 2          # bf16 W, streamed once (outer-axis tile)
        + V_pad * 4              # bias
        + T_pad * V_pad * 4      # f32 logits writeback
    )

    logits = pl.pallas_call(
        _proj_kernel,
        out_shape=jax.ShapeDtypeStruct((T_pad, V_pad), jnp.float32),
        grid_spec=pltpu.PrefetchScalarGridSpec(
            num_scalar_prefetch=0,
            # Vocab axis OUTER so the W tile index only changes on the outer
            # loop -> W is fetched from HBM exactly once in total.
            grid=(n_v, n_t),
            in_specs=[
                pl.BlockSpec((tm, D), lambda vi, ti: (ti, 0)),   # hidden tile (bf16)
                pl.BlockSpec((D, tn), lambda vi, ti: (0, vi)),   # W tile (bf16)
                pl.BlockSpec((1, tn), lambda vi, ti: (0, vi)),   # bias tile (f32)
            ],
            out_specs=pl.BlockSpec((tm, tn), lambda vi, ti: (ti, vi)),
        ),
        compiler_params=pltpu.CompilerParams(
            # No cross-iteration carries: every grid point writes a disjoint
            # logits tile, so both axes can shard across TensorCores.
            dimension_semantics=("parallel", "parallel"),
            vmem_limit_bytes=vmem_limit,
        ),
        cost_estimate=pl.CostEstimate(
            flops=flops, transcendentals=0, bytes_accessed=bytes_accessed),
    )(hidden_bf16, w_bf16, bias_2d)

    return {
        "last_hidden_state": hidden_f32.reshape(B, S, D),
        "logits": logits[:T, :V].reshape(B, S, V),
    }


def reference_forward(input_ids, emb_table, out_w, out_b):
    # Mirrors the kernel's numerics: exact f32 gather, bf16 MXU matmul with f32
    # accumulation, f32 bias add.
    hidden = emb_table.astype(jnp.float32)[input_ids]               # (B, S, D)
    B, S, D = hidden.shape
    V = out_w.shape[1]
    logits = jnp.dot(
        hidden.reshape(B * S, D).astype(jnp.bfloat16),
        out_w.astype(jnp.bfloat16),
        preferred_element_type=jnp.float32,
    ).reshape(B, S, V) + out_b.astype(jnp.float32)
    return {"last_hidden_state": hidden, "logits": logits}


if __name__ == "__main__":
    # Small synthetic config: vocab_size=512, embedding_dim=128, batch=2, seq=8.
    V, D = 512, 128
    B, S = 2, 8

    key = jax.random.PRNGKey(0)
    k_ids, k_emb, k_w, k_b = jax.random.split(key, 4)

    input_ids = jax.random.randint(k_ids, (B, S), 0, V, dtype=jnp.int32)
    emb_table = jax.random.normal(k_emb, (V, D), dtype=jnp.float32) * 0.02
    out_w = jax.random.normal(k_w, (D, V), dtype=jnp.float32) * 0.02
    out_b = jax.random.normal(k_b, (V,), dtype=jnp.float32) * 0.02

    # tn=256 so the demo exercises the multi-tile vocab axis (grid = (2, 1)).
    out = neural_lm_forward(input_ids, emb_table, out_w, out_b, tm=256, tn=256)
    jax.block_until_ready(out)

    ref = reference_forward(input_ids, emb_table, out_w, out_b)
    assert out["last_hidden_state"].shape == (B, S, D)
    assert out["logits"].shape == (B, S, V)
    assert jnp.allclose(out["last_hidden_state"], ref["last_hidden_state"], atol=1e-6)
    assert jnp.allclose(out["logits"], ref["logits"], atol=1e-4, rtol=1e-4)

    print("KERNEL_OK")
</pallas_src>

<mosaic_0001>
module attributes {stable_mosaic.version = 11 : i64} {
  func.func @_proj_kernel(%arg0: i32, %arg1: i32, %arg2: memref<16x128xbf16, #tpu.memory_space<vmem>>, %arg3: memref<128x256xbf16, #tpu.memory_space<vmem>>, %arg4: memref<1x256xf32, #tpu.memory_space<vmem>>, %arg5: memref<16x256xf32, #tpu.memory_space<vmem>>) attributes {dimension_semantics = [#tpu.dimension_semantics<parallel>, #tpu.dimension_semantics<parallel>], iteration_bounds = array<i64: 2, 1>, scalar_prefetch = 0 : i64, scratch_operands = 0 : i64, tpu.core_type = #tpu.core_type<tc>, window_params = [{transform_indices = @transform_0, window_bounds = array<i64: 16, 128>}, {transform_indices = @transform_1, window_bounds = array<i64: 128, 256>}, {transform_indices = @transform_2, window_bounds = array<i64: 1, 256>}, {transform_indices = @transform_3, window_bounds = array<i64: 16, 256>}]} {
    %c0 = arith.constant 0 : index
    %c0_0 = arith.constant 0 : index
    %0 = vector.load %arg2[%c0, %c0_0] : memref<16x128xbf16, #tpu.memory_space<vmem>>, vector<16x128xbf16>
    %c0_1 = arith.constant 0 : index
    %c0_2 = arith.constant 0 : index
    %1 = vector.load %arg3[%c0_1, %c0_2] : memref<128x256xbf16, #tpu.memory_space<vmem>>, vector<128x256xbf16>
    %cst = arith.constant dense<0.000000e+00> : vector<16x256xf32>
    %2 = tpu.matmul %0, %1, %cst {dimension_numbers = #tpu.dot_dimension_numbers<[1], [0], [0], [1], [0, 0, 1, 1], [], []>} : vector<16x128xbf16>, vector<128x256xbf16>, vector<16x256xf32> -> vector<16x256xf32>
    %c0_3 = arith.constant 0 : index
    %c0_4 = arith.constant 0 : index
    %3 = vector.load %arg4[%c0_3, %c0_4] : memref<1x256xf32, #tpu.memory_space<vmem>>, vector<1x256xf32>
    %4 = vector.broadcast %3 : vector<1x256xf32> to vector<16x256xf32>
    %5 = arith.addf %2, %4 : vector<16x256xf32>
    %c0_5 = arith.constant 0 : index
    %c0_6 = arith.constant 0 : index
    %6 = vector.load %arg5[%c0_5, %c0_6] : memref<16x256xf32, #tpu.memory_space<vmem>>, vector<16x256xf32>
    tpu.vector_store %arg5[%c0_5, %c0_6], %5 {strides = array<i32>} : memref<16x256xf32, #tpu.memory_space<vmem>>, vector<16x256xf32>,
    return
  }
  func.func @transform_0(%arg0: i32, %arg1: i32) -> (i32, i32) {
    %c0_i32 = arith.constant 0 : i32
    %c0_i32_0 = arith.constant 0 : i32
    return %arg1, %c0_i32 : i32, i32
  }
  func.func @transform_1(%arg0: i32, %arg1: i32) -> (i32, i32) {
    %c0_i32 = arith.constant 0 : i32
    %c0_i32_0 = arith.constant 0 : i32
    return %c0_i32, %arg0 : i32, i32
  }
  func.func @transform_2(%arg0: i32, %arg1: i32) -> (i32, i32) {
    %c0_i32 = arith.constant 0 : i32
    %c0_i32_0 = arith.constant 0 : i32
    return %c0_i32, %arg0 : i32, i32
  }
  func.func @transform_3(%arg0: i32, %arg1: i32) -> (i32, i32) {
    %c0_i32 = arith.constant 0 : i32
    return %arg1, %arg0 : i32, i32
  }
}

</mosaic_0001>

<bundles_post_ra>
// kernel: tpu_custom_call.1
= control target key start
LH: loop header
LB: loop body
LE: loop exit
PB: predicated region body
PF: predicated region fallthrough
CT: control target
= control target key end

     0   :  { %8 = vsyncpa [#allocation3], 0  ;;  %s1102_s0 = inlined_call_operand.hbm [shape: bf16[16,128], index: 0, kind: input, shape index: {}]   ;;  %s1103_s1 = inlined_call_operand.hbm [shape: bf16[128,512], index: 1, kind: input, shape index: {}]   ;;  %s1104_s2 = inlined_call_operand.vmem [shape: f32[1,512], index: 2, kind: input, shape index: {}]   ;;  %s1105_s3 = inlined_call_operand.hbm [shape: f32[16,512], index: 3, kind: output, shape index: {}]  }
   0x1   :  { %9 = vsyncpa [#allocation6], 0 }
   0x2   :  { %11 = vsyncpa [#allocation6 + $0x1], 0 }
   0x3   :  { %12 = vsyncpa [#allocation4], 0 }
   0x4   :  { %14 = vsyncpa [#allocation4 + $0x1], 0  ;;  %s859_s12 = smov 0   ;;  %s861_s13 = smov 0  }
   0x5   :  { %s863_s14 = smov 0   ;;  %s865_s15 = smov 0  }
   0x6   :  { %s867_s16 = smov 0   ;;  %s869_s17 = smov 0  }
   0x7 LB: > { %s537_s18 = sadd.s32 4294967295, %s825_s17   ;;  %s538_s19 = sadd.s32 4294967294, %s825_s17   ;;  %s825_s17 = sphi %s869_s17, %s20_s17   ;;  %s821_s16 = sphi %s867_s16, %s1131_s16   ;;  %s817_s15 = sphi %s865_s15, %s1130_s15   ;;  %s813_s14 = sphi %s863_s14, %s1129_s14   ;;  %s809_s13 = sphi %s861_s13, %s1128_s13   ;;  %s805_s12 = sphi %s859_s12, %s1127_s12  }
   0x8   : > { %p72_p0 = scmp.ne.s32.totalorder %s813_s14, %s809_s13  ;;  %p73_p1 = scmp.eq.s32.totalorder %s825_s17, 0 }
   0x9   : > { %p78_p2 = scmp.ne.s32.totalorder %s809_s13, %s805_s12  ;;  %p896_p3 = scmp.eq.s32.totalorder %s537_s18, 0 }
   0xa   : > { %p900_p4 = por %p73_p1, %p72_p0  ;;  %p130_p5 = scmp.eq.s32.totalorder %s537_s18, 1 }
   0xb   : > { %s1112_s20 = scalar_select %p896_p3, 1, 0 }
   0xc   : > { %p906_p6 = por %p896_p3, %p78_p2  ;;  %p136_p7 = scmp.eq.s32.totalorder %s538_s19, 1 }
   0xd   : > { %p910_p8 = por %p130_p5, %p72_p0  ;;  %p539_p9 = scmp.ge.s32.totalorder %s825_s17, 1 }
   0xe   : > { %s1114_s22 = scalar_select %p906_p6, 1, 0 }
   0xf   : > { %s1115_s23 = scalar_select %p910_p8, 1, 0 }
  0x10   : > { %p915_p10 = por %p136_p7, %p78_p2  ;;  %p143_p11 = scmp.lt.s32.totalorder %s825_s17, 3 }
  0x11   : > { %s827_s26 = smov [#allocation2]   ;;  %p595_p1 = scmp.lt.s32.totalorder %s825_s17, 2 }
  0x12   : > { %s1116_s24 = scalar_select %p915_p10, 1, 0 }
  0x13   : > { %p920_p12 = pnand %p539_p9, %p143_p11  ;;  %s158_s27 = sshll.u32 %s827_s26, 4  ;;  %s924_s27 = int_to_ptr.vmem [resolvable:$true] %s158_s27 }
  0x14   : > { %p938_p2 = pnand %p595_p1, %p900_p4  ;;  %s32_s30 = sadd.s32 1, %s821_s16 }
  0x15   : > { %s1117_s25 = scalar_select %p920_p12, 1, 0 }
  0x16   : > { %p582_p13 = pneg %p920_p12  ;;  %s681_s6 = scalar_lea.hbm %s1102_s0, 128 }
  0x17   : > { %s1119_s29 = scalar_select %p938_p2, 1, 0 }
  0x18   : > { %p932_p5 = pnand %p582_p13, %p896_p3  ;;  %p682_p7 = scmp.ne.s32.totalorder %s1102_s0, %s681_s6 }
  0x19   : > { %p688_p4 = scmp.lt.u32.totalorder %s681_s6, %s1102_s0 }
  0x1a   : > { %p683_p9 = pneg %p932_p5 }
  0x1c   : > { %p684_p11 = pnand %p683_p9, %p682_p7 }
  0x1e   : > { %p685_p13 = pneg %p684_p11 }
  0x20   : > { %p690_p1 = pnand %p688_p4, %p685_p13 }
  0x22   : > { %693 = shalt.err (!%p690_p1)
}
  0x23   : > { %s694_s11 = scalar_lea.vmem %s924_s27, 128  ;;  %p702_p6 = scmp.lt.s32.totalorder %s924_s27, %s924_s27 }
  0x24   : > { %p695_p0 = scmp.ne.s32.totalorder %s924_s27, %s694_s11  ;;  %p703_p3 = scmp.lt.s32.totalorder %s694_s11, %s694_s11 }
  0x26   : > { %p697_p10 = pnand %p695_p0, %p683_p9  ;;  %p704_p12 = por %p703_p3, %p702_p6 }
  0x28   : > { %p698_p8 = pneg %p697_p10 }
  0x2a   : > { %p705_p2 = pnand %p704_p12, %p698_p8 }
  0x2c   : > { %708 = shalt.err (!%p705_p2)
}
  0x2d   : > { %s828_s18 = smov 64   ;;  %s829_s19 = smov 4  }
  0x2e   : > { %585 = dma.hbm_to_vmem [thread:$0]  (!%p932_p5), %s1102_s0, 128, %s924_s27, [#allocation3], %s828_s18, %s828_s18, %s829_s19  }
  0x2f   : > { %p34_p10 = scmp.ge.s32.totalorder %s32_s30, 2  ;;  %s65_s4 = sadd.s32 1, %s813_s14 }
  0x30   : > { %s172_s5 = sand.u32 1, %s813_s14   ;;  %s572_s8 = sshll.u32 %s821_s16, 7 }
  0x31   : > { %s1133_s30 = smov (%p34_p10, %s32_s30), 0  ;;  %s542_s6 = sshll.u32 %s172_s5, 7 }
  0x32   : > { %s62_s7 = ssub.s32 %s821_s16, %s1133_s30  ;;  %s974_s28 = scalar_lea.hbm %s1103_s1, %s572_s8 }
  0x33   : > { %p63_p3 = scmp.eq.s32.totalorder %s62_s7, 0  ;;  %s176_s27 = scalar_lea.vmem [#allocation5], %s542_s6 }
  0x34   : > { %s183_s11 = sshll.u32 %s176_s27, 4  ;;  %s981_s19 = scalar_lea.sflag [#allocation6], %s172_s5  ;;  %s979_s11 = int_to_ptr.vmem [resolvable:$true] %s183_s11 }
  0x35   : > { %s977_s18 = scalar_select %p63_p3, %s813_s14, %s65_s4  }
  0x36   : > { %s709_s21 = scalar_lea.hbm %s974_s28, 2048  ;;  %p1120_p8 = scmp.ne.s32.totalorder %s1119_s29, 0 }
  0x37   : > { %p710_p6 = scmp.ne.s32.totalorder %s974_s28, %s709_s21  ;;  %s714_s8 = scalar_lea.hbm %s1103_s1, 4096 }
  0x38   : > { %p711_p12 = pneg %p1120_p8  ;;  %p715_p2 = scmp.lt.u32.totalorder %s974_s28, %s1103_s1 }
  0x39   : > { %p716_p7 = scmp.lt.u32.totalorder %s714_s8, %s709_s21  ;;  %p718_p11 = scmp.lt.u32.totalorder %s709_s21, %s974_s28 }
  0x3a   : > { %p712_p0 = pnand %p711_p12, %p710_p6 }
  0x3b   : > { %p717_p9 = por %p716_p7, %p715_p2 }
  0x3c   : > { %p713_p5 = pneg %p712_p0 }
  0x3d   : > { %p719_p13 = por %p718_p11, %p717_p9 }
  0x3f   : > { %p720_p4 = pnand %p719_p13, %p713_p5 }
  0x41   : > { %723 = shalt.err (!%p720_p4)
}
  0x42   : > { %s724_s4 = scalar_lea.vmem %s979_s11, 2048  ;;  %s830_s5 = smov [#allocation5]  }
  0x43   : > { %p725_p1 = scmp.ne.s32.totalorder %s979_s11, %s724_s4  ;;  %s729_s10 = sshll.u32 %s830_s5, 4  ;;  %s730_s10 = int_to_ptr.vmem [resolvable:$false] %s729_s10 }
  0x44   : > { %s731_s27 = scalar_lea.vmem %s730_s10, 4096  ;;  %p732_p6 = scmp.lt.s32.totalorder %s979_s11, %s730_s10 }
  0x45   : > { %p727_p10 = pnand %p725_p1, %p711_p12  ;;  %p733_p0 = scmp.lt.s32.totalorder %s731_s27, %s724_s4 }
  0x47   : > { %p728_p3 = pneg %p727_p10  ;;  %p734_p2 = por %p733_p0, %p732_p6 }
  0x49   : > { %p735_p7 = pnand %p734_p2, %p728_p3 }
  0x4b   : > { %738 = shalt.err (!%p735_p7)
}
  0x4c   : > { %s831_s21 = smov 256   ;;  %s832_s26 = smov 128  }
  0x4d   : > { %s833_s7 = smov 8   ;;  %p1121_p12 = scmp.ne.s32.totalorder %s1117_s25, 0 }
  0x4e   : > { %589 = dma.hbm_to_vmem [thread:$0]  (!%p1120_p8), %s974_s28, 2048, %s979_s11, %s981_s19, %s831_s21, %s832_s26, %s833_s7  }
  0x4f   : > { %203 = sbr.rel (%p1121_p12) target bundleno = 357 (0x165), region = 32  ;;  %p1122_p5 = scmp.ne.s32.totalorder (!%p1121_p12), %s1112_s20, 0 }
  0x56   : > { %792 = dma.done.wait (%p1122_p5), [#allocation3], 128  }
  0x57   : > { %794 = vsyncadd (%p1122_p5), [#allocation3], 4294967168  ;;  %s1016_s8 = sand.u32 1, %s809_s13   ;;  %p1123_p8 = scmp.ne.s32.totalorder %s1114_s22, 0 }
  0x58   : > { %s547_s6 = sshll.u32 %s1016_s8, 7  ;;  %s210_s9 = scalar_lea.sflag [#allocation6], %s1016_s8 }
  0x59   : > { %s1020_s4 = scalar_lea.vmem [#allocation5], %s547_s6 }
  0x5a   : > { %796 = dma.done.wait (%p1123_p8), %s210_s9, 2048  }
  0x5b   : > { %798 = vsyncadd (%p1123_p8), %s210_s9, 4294965248  ;;  %v834_v0 = vmov 0   ;;  %v656_v1 = vld [vmem:[%s1020_s4 + $0x4] ss:$8 sps:$4 sm:$0xff]   ;;  %v658_v2 = vld [vmem:[%s1020_s4] ss:$8 sps:$4 sm:$0xff]   ;;  %v270_v18 = vlaneseq }
  0x5c   : > { %398 = vmatprep.mubr.bf16.mxu0 %v834_v0  ;;  %366 = vmatprep.subr.bf16.mxu0 %v656_v1  ;;  %v659_v3 = vld [vmem:[%s1020_s4 + $0x14] ss:$8 sps:$4 sm:$0xff]   ;;  %v661_v4 = vld [vmem:[%s1020_s4 + $0x10] ss:$8 sps:$4 sm:$0xff]   ;;  %v662_v5 = vld [vmem:[%s1020_s4 + $0x24] ss:$8 sps:$4 sm:$0xff]  }
  0x5d   : > { %367 = vmatpush1.bf16.msra.mxu0 %v658_v2  ;;  %v664_v6 = vld [vmem:[%s1020_s4 + $0x20] ss:$8 sps:$4 sm:$0xff]   ;;  %v665_v7 = vld [vmem:[%s1020_s4 + $0x34] ss:$8 sps:$4 sm:$0xff]   ;;  %v667_v8 = vld [vmem:[%s1020_s4 + $0x30] ss:$8 sps:$4 sm:$0xff]  }
  0x5e   : > { %368 = vmatprep.subr.bf16.mxu0 %v659_v3  ;;  %v668_v9 = vld [vmem:[%s1020_s4 + $0x44] ss:$8 sps:$4 sm:$0xff]   ;;  %v670_v10 = vld [vmem:[%s1020_s4 + $0x40] ss:$8 sps:$4 sm:$0xff]   ;;  %v671_v11 = vld [vmem:[%s1020_s4 + $0x54] ss:$8 sps:$4 sm:$0xff]  }
  0x5f   : > { %v673_v12 = vld [vmem:[%s1020_s4 + $0x50] ss:$8 sps:$4 sm:$0xff]   ;;  %v674_v13 = vld [vmem:[%s1020_s4 + $0x64] ss:$8 sps:$4 sm:$0xff]   ;;  %v676_v14 = vld [vmem:[%s1020_s4 + $0x60] ss:$8 sps:$4 sm:$0xff]  }
  0x60   : > { %v677_v15 = vld [vmem:[%s1020_s4 + $0x74] ss:$8 sps:$4 sm:$0xff]   ;;  %v679_v16 = vld [vmem:[%s1020_s4 + $0x70] ss:$8 sps:$4 sm:$0xff]   ;;  %s549_s20 = sshll.u32 %s817_s15, 1  ;;  %v271_v19 = vshrl.u32 %v270_v18, 7 }
  0x61   : > { %369 = vmatpush1.bf16.msra.mxu0 %v661_v4  ;;  %v680_v17 = vld [vmem:[#allocation2] sm:$0xff]   ;;  %p243_p9 = scmp.lt.s32.totalorder %s549_s20, 3  ;;  %s548_s28 = sshll.u32 %s1016_s8, 5 }
  0x62   : > { %370 = vmatprep.subr.bf16.mxu0 %v662_v5  ;;  %v272_v20 = vsub.s32 0, %v271_v19  ;;  %v276_v22 = vsub.s32 1, %v271_v19  ;;  %s239_s11 = scalar_lea.vmem [#allocation7], %s548_s28  ;;  %s573_s5 = sshll.u32 %s817_s15, 8 }
  0x63   : > { %s1135_s20 = smov (!%p243_p9, %s549_s20), 3  ;;  %s430_s19 = sshll.u32 %s239_s11, 4  ;;  %s1048_s19 = int_to_ptr.vmem [resolvable:$true] %s430_s19 }
  0x64   : > { %s245_s29 = scalar_lea.vmem %s1104_s2, %s1135_s20  ;;  %s1053_s21 = scalar_lea.hbm %s1105_s3, %s573_s5 }
  0x65   : > { %371 = vmatpush1.bf16.msra.mxu0 %v664_v6  ;;  %v268_v21 = vld [vmem:[%s245_s29] sm:$0x3]  ;;  %s414_s15 = scalar_lea.sflag [#allocation4], %s1016_s8  ;;  %s739_s26 = scalar_lea.vmem %s1048_s19, 512 }
  0x66   : > { %372 = vmatprep.subr.bf16.mxu0 %v665_v7  ;;  %v273_v23 = vrot.slane %v268_v21, %v272_v20  ;;  %v277_v24 = vrot.slane %v268_v21, %v276_v22  ;;  %p740_p11 = scmp.ne.s32.totalorder %s1048_s19, %s739_s26  ;;  %p1124_p13 = scmp.ne.s32.totalorder %s1115_s23, 0 }
  0x67   : > { %s835_s7 = smov [#allocation7]  }
  0x68   : > { %p741_p4 = pnand %p740_p11, %p1124_p13  ;;  %s743_s6 = sshll.u32 %s835_s7, 4  ;;  %s744_s6 = int_to_ptr.vmem [resolvable:$false] %s743_s6 }
  0x69   : > { %373 = vmatpush1.bf16.msra.mxu0 %v667_v8  ;;  %s745_s9 = scalar_lea.vmem %s744_s6, 1024  ;;  %p746_p10 = scmp.lt.s32.totalorder %s1048_s19, %s744_s6 }
  0x6a   : > { %374 = vmatprep.subr.bf16.mxu0 %v668_v9  ;;  %p742_p1 = pneg %p741_p4  ;;  %p747_p3 = scmp.lt.s32.totalorder %s745_s9, %s739_s26 }
  0x6c   : > { %p748_p6 = por %p747_p3, %p746_p10 }
  0x6d   : > { %375 = vmatpush1.bf16.msra.mxu0 %v670_v10 }
  0x6e   : > { %376 = vmatprep.subr.bf16.mxu0 %v671_v11  ;;  %p749_p0 = pnand %p748_p6, %p742_p1 }
  0x71   : > { %377 = vmatpush1.bf16.msra.mxu0 %v673_v12 }
  0x72   : > { %378 = vmatprep.subr.bf16.mxu0 %v674_v13 }
  0x75   : > { %379 = vmatpush1.bf16.msra.mxu0 %v676_v14 }
  0x76   : > { %380 = vmatprep.subr.bf16.mxu0 %v677_v15 }
  0x79   : > { %381 = vmatpush1.bf16.msra.mxu0 %v679_v16 }
  0x7c   : > { %399 = vmatmul.mubr.bf16.vlgmr.msra.gmra.mrb[0].mxu0 %v680_v17 }
 0x14f   : > { %v400_v25 = vpop.f32.mrb[0].mxu0 }
 0x150   : > { %v401_v26 = vadd.f32 %v400_v25, %v273_v23  ;;  %v402_v27 = vpop.f32.mrb[1].mxu0 }
 0x151   : > { %v403_v28 = vadd.f32 %v402_v27, %v277_v24  ;;  %v404_v29 = vpop.f32.mrb[2].mxu0 }
 0x152   : > { %409 = vst [vmem:[%s239_s11] sm:$0xff] %v401_v26  ;;  %v405_v30 = vadd.f32 %v404_v29, %v273_v23  ;;  %v406_v31 = vpop.f32.mrb[3].mxu0 }
 0x153   : > { %410 = vst [vmem:[%s239_s11 + $0x8] sm:$0xff] %v403_v28  ;;  %v407_v32 = vadd.f32 %v406_v31, %v277_v24 }
 0x154   : > { %411 = vst [vmem:[%s239_s11 + $0x10] sm:$0xff] %v405_v30 }
 0x155   : > { %412 = vst [vmem:[%s239_s11 + $0x18] sm:$0xff] %v407_v32 }
 0x156   : > { %752 = shalt.err (!%p749_p0)
}
 0x157   : > { %s753_s4 = scalar_lea.hbm %s1053_s21, 512  ;;  %s757_s25 = scalar_lea.hbm %s1105_s3, 1024 }
 0x158   : > { %p754_p2 = scmp.ne.s32.totalorder %s1053_s21, %s753_s4  ;;  %p758_p5 = scmp.lt.u32.totalorder %s1053_s21, %s1105_s3 }
 0x159   : > { %p759_p8 = scmp.lt.u32.totalorder %s757_s25, %s753_s4  ;;  %p761_p11 = scmp.lt.u32.totalorder %s753_s4, %s1053_s21 }
 0x15a   : > { %p755_p7 = pnand %p754_p2, %p1124_p13 }
 0x15b   : > { %p760_p9 = por %p759_p8, %p758_p5 }
 0x15c   : > { %p756_p12 = pneg %p755_p7 }
 0x15d   : > { %p762_p4 = por %p761_p11, %p760_p9 }
 0x15f   : > { %p763_p1 = pnand %p762_p4, %p756_p12 }
 0x161   : > { %766 = shalt.err (!%p763_p1)
}
 0x162   : > { %s836_s11 = smov 256   ;;  %s837_s5 = smov 512  }
 0x163   : > { %s838_s10 = smov 16  }
 0x164   : > { %580 = dma.vmem_to_hbm [thread:$0]  (%p1124_p13), %s1048_s19, 512, %s1053_s21, %s414_s15, %s836_s11, %s837_s5, %s838_s10  }
 0x165 PF: > { %s445_s27 = sand.u32 1, %s805_s12   ;;  %p1125_p10 = scmp.ne.s32.totalorder %s1116_s24, 0 }
 0x166   : > { %p1126_p3 = scmp.ge.s32.totalorder %s825_s17, 2  ;;  %s446_s26 = scalar_lea.sflag [#allocation4], %s445_s27 }
 0x168   : > { %p591_p6 = pnand %p1126_p3, %p1125_p10 }
 0x16a   : > { %800 = dma.done.wait (!%p591_p6), %s446_s26, 512  }
 0x16b   : > { %802 = vsyncadd (!%p591_p6), %s446_s26, 4294966784  ;;  %s20_s17 = sadd.s32 1, %s825_s17   ;;  %s1127_s12 = smov %s809_s13 }
 0x16c   : > { %p17_p0 = scmp.ge.s32.totalorder %s20_s17, 4   ;;  %s1128_s13 = smov %s813_s14 }
 0x16d   : > { %s1129_s14 = smov %s977_s18  ;;  %s1130_s15 = smov %s821_s16 }
 0x16e   : > { %s1131_s16 = smov %s1133_s30  ;;  %19 = sbr.rel (!%p17_p0) target bundleno = 7 (0x7), region = 86 }
 0x175   :  { %451 = vsyncpa [#allocation3], 1 }
 0x176   :  { %453 = vsyncpa [#allocation3 + $0x1], 1 }
 0x177   :  { %454 = vsyncpa [#allocation6], 1 }
 0x178   :  { %456 = vsyncpa [#allocation6 + $0x1], 1 }
 0x179   :  { %457 = vsyncpa [#allocation4], 1 }
 0x17a   :  { %459 = vsyncpa [#allocation4 + $0x1], 1 }

</bundles_post_ra>
